<compile_context>
chip_gen: v6e
topology: v6e:2x2x1
jax: 0.10.0
libtpu: 0.0.40
codegen_flags: <defaults>
</compile_context>

<pallas_src>
import functools

import jax
import jax.numpy as jnp
from jax.experimental import pallas as pl
from jax.experimental.pallas import tpu as pltpu


LANE = 128  # lane width: pad every feature dim to a multiple of this


def _round_up(n, m):
    return ((n + m - 1) // m) * m


# -----------------------------------------------------------------------------
# Kernel: entire 6-layer MLP fused, all (padded) weights resident in VMEM.
# -----------------------------------------------------------------------------
def _mlp_kernel(x_ref,
                w1_ref, b1_ref,
                w2_ref, b2_ref,
                w3_ref, b3_ref,
                w4_ref, b4_ref,
                w5_ref, b5_ref,
                w6_ref, b6_ref,
                out_ref):
    h = x_ref[...]

    def linear(h, w_ref, b_ref, relu):
        y = jnp.dot(h, w_ref[...], preferred_element_type=jnp.float32) + b_ref[...]
        return jnp.maximum(y, 0.0) if relu else y

    h = linear(h, w1_ref, b1_ref, relu=True)
    h = linear(h, w2_ref, b2_ref, relu=True)
    h = linear(h, w3_ref, b3_ref, relu=True)
    h = linear(h, w4_ref, b4_ref, relu=True)
    h = linear(h, w5_ref, b5_ref, relu=True)
    y = linear(h, w6_ref, b6_ref, relu=False)   # fc6: no activation
    out_ref[...] = y.astype(out_ref.dtype)


# -----------------------------------------------------------------------------
# One-time parameter prep (OUTSIDE the hot path):
#   PyTorch layout W:[out,in], b:[out]  ->  padded W^T:[in_pad,out_pad], b:[1,out_pad]
# -----------------------------------------------------------------------------
def prepare_params(params, dtype=jnp.float32):
    prepped = []
    for (W, b) in params:
        W = jnp.asarray(W, dtype)                 # [out, in]
        b = jnp.asarray(b, dtype)                 # [out]
        out_f, in_f = W.shape
        in_p = _round_up(in_f, LANE)
        out_p = _round_up(out_f, LANE)
        Wt = jnp.zeros((in_p, out_p), dtype).at[:in_f, :out_f].set(W.T)
        bp = jnp.zeros((1, out_p), dtype).at[0, :out_f].set(b)
        prepped.append((Wt, bp))
    return tuple(prepped)


# -----------------------------------------------------------------------------
# Forward wrapper: pads x to lane-dense, tiles the batch on a parallel grid,
# slices the real [batch, num_classes] back out of the padded output.
# -----------------------------------------------------------------------------
@functools.partial(jax.jit, static_argnames=("num_classes",))
def neural_net_forward(x, prepped_params, num_classes):
    batch, in_f = x.shape
    in_p = prepped_params[0][0].shape[0]          # padded input features
    out_p = prepped_params[-1][0].shape[1]        # padded output features

    # ---- batch tiling ---------------------------------------------------
    if batch >= 256:
        tb = 256
    else:
        tb = _round_up(batch, 8)
    batch_p = _round_up(batch, tb)
    n_tiles = batch_p // tb

    # ---- lane-dense, tile-aligned input ---------------------------------
    x_p = jnp.zeros((batch_p, in_p), jnp.float32).at[:batch, :in_f].set(
        x.astype(jnp.float32))

    flat_args = []
    for (Wt, bp) in prepped_params:
        flat_args.append(Wt)
        flat_args.append(bp)

    # x / out blocks move with the batch-tile index; weights & biases use a
    # constant index map so they stay VMEM-resident across all tiles.
    in_specs = [pl.BlockSpec((tb, in_p), lambda i: (i, 0))]
    for a in flat_args:
        in_specs.append(pl.BlockSpec(a.shape, lambda i: (0, 0)))
    out_spec = pl.BlockSpec((tb, out_p), lambda i: (i, 0))

    out_padded = pl.pallas_call(
        _mlp_kernel,
        grid=(n_tiles,),
        in_specs=in_specs,
        out_specs=out_spec,
        out_shape=jax.ShapeDtypeStruct((batch_p, out_p), jnp.float32),
        compiler_params=pltpu.CompilerParams(
            dimension_semantics=("parallel",)),
    )(x_p, *flat_args)

    return out_padded[:batch, :num_classes]


# -----------------------------------------------------------------------------
# Deterministic init in PyTorch nn.Linear layout + pure-JAX reference.
# -----------------------------------------------------------------------------
def _init_params(key, input_size, hidden_size, num_classes):
    sizes = [(hidden_size, input_size),
             (hidden_size, hidden_size),
             (hidden_size, hidden_size),
             (hidden_size, hidden_size),
             (hidden_size, hidden_size),
             (num_classes, hidden_size)]
    params = []
    for (out_f, in_f) in sizes:
        key, kw, kb = jax.random.split(key, 3)
        bound = 1.0 / jnp.sqrt(in_f)              # PyTorch default uniform bound
        W = jax.random.uniform(kw, (out_f, in_f), jnp.float32, -bound, bound)
        b = jax.random.uniform(kb, (out_f,), jnp.float32, -bound, bound)
        params.append((W, b))
    return params


def _reference_forward(x, params):
    h = x
    for i, (W, b) in enumerate(params):
        h = h @ W.T + b
        if i < len(params) - 1:
            h = jnp.maximum(h, 0.0)
    return h


if __name__ == "__main__":
    key = jax.random.PRNGKey(0)
    batch, input_size, hidden_size, num_classes = 8, 16, 32, 8

    k_x, k_p = jax.random.split(key)
    x = jax.random.normal(k_x, (batch, input_size), jnp.float32)
    params = _init_params(k_p, input_size, hidden_size, num_classes)

    # One-time prep (transpose + 128-lane pad) outside the hot path.
    prepped = prepare_params(params)

    out = neural_net_forward(x, prepped, num_classes)
    out = jax.block_until_ready(out)

    ref = _reference_forward(x, params)
    assert out.shape == (batch, num_classes)
    assert jnp.allclose(out, ref, atol=1e-4, rtol=1e-4), "mismatch vs reference"

    print("KERNEL_OK")
</pallas_src>

<mosaic_0001>
module attributes {stable_mosaic.version = 11 : i64} {
  func.func @_mlp_kernel(%arg0: i32, %arg1: memref<8x128xf32, #tpu.memory_space<vmem>>, %arg2: memref<128x128xf32, #tpu.memory_space<vmem>>, %arg3: memref<1x128xf32, #tpu.memory_space<vmem>>, %arg4: memref<128x128xf32, #tpu.memory_space<vmem>>, %arg5: memref<1x128xf32, #tpu.memory_space<vmem>>, %arg6: memref<128x128xf32, #tpu.memory_space<vmem>>, %arg7: memref<1x128xf32, #tpu.memory_space<vmem>>, %arg8: memref<128x128xf32, #tpu.memory_space<vmem>>, %arg9: memref<1x128xf32, #tpu.memory_space<vmem>>, %arg10: memref<128x128xf32, #tpu.memory_space<vmem>>, %arg11: memref<1x128xf32, #tpu.memory_space<vmem>>, %arg12: memref<128x128xf32, #tpu.memory_space<vmem>>, %arg13: memref<1x128xf32, #tpu.memory_space<vmem>>, %arg14: memref<8x128xf32, #tpu.memory_space<vmem>>) attributes {dimension_semantics = [#tpu.dimension_semantics<parallel>], iteration_bounds = array<i64: 1>, scalar_prefetch = 0 : i64, scratch_operands = 0 : i64, tpu.core_type = #tpu.core_type<tc>, window_params = [{transform_indices = @transform_0, window_bounds = array<i64: 8, 128>}, {pipeline_mode = #tpu.pipeline_mode<synchronous>, transform_indices = @transform_1, window_bounds = array<i64: 128, 128>}, {pipeline_mode = #tpu.pipeline_mode<synchronous>, transform_indices = @transform_2, window_bounds = array<i64: 1, 128>}, {pipeline_mode = #tpu.pipeline_mode<synchronous>, transform_indices = @transform_3, window_bounds = array<i64: 128, 128>}, {pipeline_mode = #tpu.pipeline_mode<synchronous>, transform_indices = @transform_4, window_bounds = array<i64: 1, 128>}, {pipeline_mode = #tpu.pipeline_mode<synchronous>, transform_indices = @transform_5, window_bounds = array<i64: 128, 128>}, {pipeline_mode = #tpu.pipeline_mode<synchronous>, transform_indices = @transform_6, window_bounds = array<i64: 1, 128>}, {pipeline_mode = #tpu.pipeline_mode<synchronous>, transform_indices = @transform_7, window_bounds = array<i64: 128, 128>}, {pipeline_mode = #tpu.pipeline_mode<synchronous>, transform_indices = @transform_8, window_bounds = array<i64: 1, 128>}, {pipeline_mode = #tpu.pipeline_mode<synchronous>, transform_indices = @transform_9, window_bounds = array<i64: 128, 128>}, {pipeline_mode = #tpu.pipeline_mode<synchronous>, transform_indices = @transform_10, window_bounds = array<i64: 1, 128>}, {pipeline_mode = #tpu.pipeline_mode<synchronous>, transform_indices = @transform_11, window_bounds = array<i64: 128, 128>}, {pipeline_mode = #tpu.pipeline_mode<synchronous>, transform_indices = @transform_12, window_bounds = array<i64: 1, 128>}, {transform_indices = @transform_13, window_bounds = array<i64: 8, 128>}]} {
    %c0 = arith.constant 0 : index
    %c0_0 = arith.constant 0 : index
    %0 = vector.load %arg1[%c0, %c0_0] : memref<8x128xf32, #tpu.memory_space<vmem>>, vector<8x128xf32>
    %c0_1 = arith.constant 0 : index
    %c0_2 = arith.constant 0 : index
    %1 = vector.load %arg2[%c0_1, %c0_2] : memref<128x128xf32, #tpu.memory_space<vmem>>, vector<128x128xf32>
    %cst = arith.constant dense<0.000000e+00> : vector<8x128xf32>
    %2 = tpu.matmul %0, %1, %cst {dimension_numbers = #tpu.dot_dimension_numbers<[1], [0], [0], [1], [0, 0, 1, 1], [], []>} : vector<8x128xf32>, vector<128x128xf32>, vector<8x128xf32> -> vector<8x128xf32>
    %c0_3 = arith.constant 0 : index
    %c0_4 = arith.constant 0 : index
    %3 = vector.load %arg3[%c0_3, %c0_4] : memref<1x128xf32, #tpu.memory_space<vmem>>, vector<1x128xf32>
    %4 = vector.broadcast %3 : vector<1x128xf32> to vector<8x128xf32>
    %5 = arith.addf %2, %4 : vector<8x128xf32>
    %cst_5 = arith.constant 0.000000e+00 : f32
    %6 = vector.broadcast %cst_5 : f32 to vector<8x128xf32>
    %7 = arith.maximumf %5, %6 : vector<8x128xf32>
    %c0_6 = arith.constant 0 : index
    %c0_7 = arith.constant 0 : index
    %8 = vector.load %arg4[%c0_6, %c0_7] : memref<128x128xf32, #tpu.memory_space<vmem>>, vector<128x128xf32>
    %cst_8 = arith.constant dense<0.000000e+00> : vector<8x128xf32>
    %9 = tpu.matmul %7, %8, %cst_8 {dimension_numbers = #tpu.dot_dimension_numbers<[1], [0], [0], [1], [0, 0, 1, 1], [], []>} : vector<8x128xf32>, vector<128x128xf32>, vector<8x128xf32> -> vector<8x128xf32>
    %c0_9 = arith.constant 0 : index
    %c0_10 = arith.constant 0 : index
    %10 = vector.load %arg5[%c0_9, %c0_10] : memref<1x128xf32, #tpu.memory_space<vmem>>, vector<1x128xf32>
    %11 = vector.broadcast %10 : vector<1x128xf32> to vector<8x128xf32>
    %12 = arith.addf %9, %11 : vector<8x128xf32>
    %cst_11 = arith.constant 0.000000e+00 : f32
    %13 = vector.broadcast %cst_11 : f32 to vector<8x128xf32>
    %14 = arith.maximumf %12, %13 : vector<8x128xf32>
    %c0_12 = arith.constant 0 : index
    %c0_13 = arith.constant 0 : index
    %15 = vector.load %arg6[%c0_12, %c0_13] : memref<128x128xf32, #tpu.memory_space<vmem>>, vector<128x128xf32>
    %cst_14 = arith.constant dense<0.000000e+00> : vector<8x128xf32>
    %16 = tpu.matmul %14, %15, %cst_14 {dimension_numbers = #tpu.dot_dimension_numbers<[1], [0], [0], [1], [0, 0, 1, 1], [], []>} : vector<8x128xf32>, vector<128x128xf32>, vector<8x128xf32> -> vector<8x128xf32>
    %c0_15 = arith.constant 0 : index
    %c0_16 = arith.constant 0 : index
    %17 = vector.load %arg7[%c0_15, %c0_16] : memref<1x128xf32, #tpu.memory_space<vmem>>, vector<1x128xf32>
    %18 = vector.broadcast %17 : vector<1x128xf32> to vector<8x128xf32>
    %19 = arith.addf %16, %18 : vector<8x128xf32>
    %cst_17 = arith.constant 0.000000e+00 : f32
    %20 = vector.broadcast %cst_17 : f32 to vector<8x128xf32>
    %21 = arith.maximumf %19, %20 : vector<8x128xf32>
    %c0_18 = arith.constant 0 : index
    %c0_19 = arith.constant 0 : index
    %22 = vector.load %arg8[%c0_18, %c0_19] : memref<128x128xf32, #tpu.memory_space<vmem>>, vector<128x128xf32>
    %cst_20 = arith.constant dense<0.000000e+00> : vector<8x128xf32>
    %23 = tpu.matmul %21, %22, %cst_20 {dimension_numbers = #tpu.dot_dimension_numbers<[1], [0], [0], [1], [0, 0, 1, 1], [], []>} : vector<8x128xf32>, vector<128x128xf32>, vector<8x128xf32> -> vector<8x128xf32>
    %c0_21 = arith.constant 0 : index
    %c0_22 = arith.constant 0 : index
    %24 = vector.load %arg9[%c0_21, %c0_22] : memref<1x128xf32, #tpu.memory_space<vmem>>, vector<1x128xf32>
    %25 = vector.broadcast %24 : vector<1x128xf32> to vector<8x128xf32>
    %26 = arith.addf %23, %25 : vector<8x128xf32>
    %cst_23 = arith.constant 0.000000e+00 : f32
    %27 = vector.broadcast %cst_23 : f32 to vector<8x128xf32>
    %28 = arith.maximumf %26, %27 : vector<8x128xf32>
    %c0_24 = arith.constant 0 : index
    %c0_25 = arith.constant 0 : index
    %29 = vector.load %arg10[%c0_24, %c0_25] : memref<128x128xf32, #tpu.memory_space<vmem>>, vector<128x128xf32>
    %cst_26 = arith.constant dense<0.000000e+00> : vector<8x128xf32>
    %30 = tpu.matmul %28, %29, %cst_26 {dimension_numbers = #tpu.dot_dimension_numbers<[1], [0], [0], [1], [0, 0, 1, 1], [], []>} : vector<8x128xf32>, vector<128x128xf32>, vector<8x128xf32> -> vector<8x128xf32>
    %c0_27 = arith.constant 0 : index
    %c0_28 = arith.constant 0 : index
    %31 = vector.load %arg11[%c0_27, %c0_28] : memref<1x128xf32, #tpu.memory_space<vmem>>, vector<1x128xf32>
    %32 = vector.broadcast %31 : vector<1x128xf32> to vector<8x128xf32>
    %33 = arith.addf %30, %32 : vector<8x128xf32>
    %cst_29 = arith.constant 0.000000e+00 : f32
    %34 = vector.broadcast %cst_29 : f32 to vector<8x128xf32>
    %35 = arith.maximumf %33, %34 : vector<8x128xf32>
    %c0_30 = arith.constant 0 : index
    %c0_31 = arith.constant 0 : index
    %36 = vector.load %arg12[%c0_30, %c0_31] : memref<128x128xf32, #tpu.memory_space<vmem>>, vector<128x128xf32>
    %cst_32 = arith.constant dense<0.000000e+00> : vector<8x128xf32>
    %37 = tpu.matmul %35, %36, %cst_32 {dimension_numbers = #tpu.dot_dimension_numbers<[1], [0], [0], [1], [0, 0, 1, 1], [], []>} : vector<8x128xf32>, vector<128x128xf32>, vector<8x128xf32> -> vector<8x128xf32>
    %c0_33 = arith.constant 0 : index
    %c0_34 = arith.constant 0 : index
    %38 = vector.load %arg13[%c0_33, %c0_34] : memref<1x128xf32, #tpu.memory_space<vmem>>, vector<1x128xf32>
    %39 = vector.broadcast %38 : vector<1x128xf32> to vector<8x128xf32>
    %40 = arith.addf %37, %39 : vector<8x128xf32>
    %c0_35 = arith.constant 0 : index
    %c0_36 = arith.constant 0 : index
    %41 = vector.load %arg14[%c0_35, %c0_36] : memref<8x128xf32, #tpu.memory_space<vmem>>, vector<8x128xf32>
    tpu.vector_store %arg14[%c0_35, %c0_36], %40 {strides = array<i32>} : memref<8x128xf32, #tpu.memory_space<vmem>>, vector<8x128xf32>,
    return
  }
  func.func @transform_0(%arg0: i32) -> (i32, i32) {
    %c0_i32 = arith.constant 0 : i32
    %c0_i32_0 = arith.constant 0 : i32
    return %arg0, %c0_i32 : i32, i32
  }
  func.func @transform_1(%arg0: i32) -> (i32, i32) {
    %c0_i32 = arith.constant 0 : i32
    %c0_i32_0 = arith.constant 0 : i32
    %c0_i32_1 = arith.constant 0 : i32
    return %c0_i32, %c0_i32_0 : i32, i32
  }
  func.func @transform_2(%arg0: i32) -> (i32, i32) {
    %c0_i32 = arith.constant 0 : i32
    %c0_i32_0 = arith.constant 0 : i32
    %c0_i32_1 = arith.constant 0 : i32
    return %c0_i32, %c0_i32_0 : i32, i32
  }
  func.func @transform_3(%arg0: i32) -> (i32, i32) {
    %c0_i32 = arith.constant 0 : i32
    %c0_i32_0 = arith.constant 0 : i32
    %c0_i32_1 = arith.constant 0 : i32
    return %c0_i32, %c0_i32_0 : i32, i32
  }
  func.func @transform_4(%arg0: i32) -> (i32, i32) {
    %c0_i32 = arith.constant 0 : i32
    %c0_i32_0 = arith.constant 0 : i32
    %c0_i32_1 = arith.constant 0 : i32
    return %c0_i32, %c0_i32_0 : i32, i32
  }
  func.func @transform_5(%arg0: i32) -> (i32, i32) {
    %c0_i32 = arith.constant 0 : i32
    %c0_i32_0 = arith.constant 0 : i32
    %c0_i32_1 = arith.constant 0 : i32
    return %c0_i32, %c0_i32_0 : i32, i32
  }
  func.func @transform_6(%arg0: i32) -> (i32, i32) {
    %c0_i32 = arith.constant 0 : i32
    %c0_i32_0 = arith.constant 0 : i32
    %c0_i32_1 = arith.constant 0 : i32
    return %c0_i32, %c0_i32_0 : i32, i32
  }
  func.func @transform_7(%arg0: i32) -> (i32, i32) {
    %c0_i32 = arith.constant 0 : i32
    %c0_i32_0 = arith.constant 0 : i32
    %c0_i32_1 = arith.constant 0 : i32
    return %c0_i32, %c0_i32_0 : i32, i32
  }
  func.func @transform_8(%arg0: i32) -> (i32, i32) {
    %c0_i32 = arith.constant 0 : i32
    %c0_i32_0 = arith.constant 0 : i32
    %c0_i32_1 = arith.constant 0 : i32
    return %c0_i32, %c0_i32_0 : i32, i32
  }
  func.func @transform_9(%arg0: i32) -> (i32, i32) {
    %c0_i32 = arith.constant 0 : i32
    %c0_i32_0 = arith.constant 0 : i32
    %c0_i32_1 = arith.constant 0 : i32
    return %c0_i32, %c0_i32_0 : i32, i32
  }
  func.func @transform_10(%arg0: i32) -> (i32, i32) {
    %c0_i32 = arith.constant 0 : i32
    %c0_i32_0 = arith.constant 0 : i32
    %c0_i32_1 = arith.constant 0 : i32
    return %c0_i32, %c0_i32_0 : i32, i32
  }
  func.func @transform_11(%arg0: i32) -> (i32, i32) {
    %c0_i32 = arith.constant 0 : i32
    %c0_i32_0 = arith.constant 0 : i32
    %c0_i32_1 = arith.constant 0 : i32
    return %c0_i32, %c0_i32_0 : i32, i32
  }
  func.func @transform_12(%arg0: i32) -> (i32, i32) {
    %c0_i32 = arith.constant 0 : i32
    %c0_i32_0 = arith.constant 0 : i32
    %c0_i32_1 = arith.constant 0 : i32
    return %c0_i32, %c0_i32_0 : i32, i32
  }
  func.func @transform_13(%arg0: i32) -> (i32, i32) {
    %c0_i32 = arith.constant 0 : i32
    %c0_i32_0 = arith.constant 0 : i32
    return %arg0, %c0_i32 : i32, i32
  }
}

</mosaic_0001>

<bundles_post_ra>
// kernel: neural_net_forward.1
= control target key start
LH: loop header
LB: loop body
LE: loop exit
PB: predicated region body
PF: predicated region fallthrough
CT: control target
= control target key end

     0   :  { %18 = vsyncpa [#allocation3], 0  ;;  %s1438_s0 = inlined_call_operand.vmem [shape: f32[8,128], index: 0, kind: input, shape index: {}]   ;;  %s1439_s1 = inlined_call_operand.hbm [shape: f32[128,128], index: 1, kind: input, shape index: {}]   ;;  %s1440_s2 = inlined_call_operand.vmem [shape: f32[1,128], index: 2, kind: input, shape index: {}]   ;;  %s1441_s3 = inlined_call_operand.hbm [shape: f32[128,128], index: 3, kind: input, shape index: {}]   ;;  %s1442_s4 = inlined_call_operand.vmem [shape: f32[1,128], index: 4, kind: input, shape index: {}]   ;;  %s1443_s5 = inlined_call_operand.hbm [shape: f32[128,128], index: 5, kind: input, shape index: {}]   ;;  %s1444_s6 = inlined_call_operand.vmem [shape: f32[1,128], index: 6, kind: input, shape index: {}]   ;;  %s1445_s7 = inlined_call_operand.hbm [shape: f32[128,128], index: 7, kind: input, shape index: {}]   ;;  %s1446_s8 = inlined_call_operand.vmem [shape: f32[1,128], index: 8, kind: input, shape index: {}]   ;;  %s1447_s9 = inlined_call_operand.hbm [shape: f32[128,128], index: 9, kind: input, shape index: {}]   ;;  %s1448_s10 = inlined_call_operand.vmem [shape: f32[1,128], index: 10, kind: input, shape index: {}]   ;;  %s1449_s11 = inlined_call_operand.hbm [shape: f32[128,128], index: 11, kind: input, shape index: {}]   ;;  %s1450_s12 = inlined_call_operand.vmem [shape: f32[1,128], index: 12, kind: input, shape index: {}]   ;;  %s1451_s13 = inlined_call_operand.hbm [shape: f32[8,128], index: 13, kind: output, shape index: {}]  }
   0x1   :  { %19 = vsyncpa [#allocation6], 0 }
   0x2   :  { %20 = vsyncpa [#allocation9], 0 }
   0x3   :  { %21 = vsyncpa [#allocation12], 0 }
   0x4   :  { %22 = vsyncpa [#allocation4], 0  ;;  %s1189_s25 = smov [#allocation5]   ;;  %s1190_s27 = smov [#allocation8]  }
   0x5   :  { %s44_s26 = sshll.u32 %s1189_s25, 4  ;;  %s72_s28 = sshll.u32 %s1190_s27, 4  ;;  %s45_s26 = int_to_ptr.vmem [resolvable:$true] %s44_s26  ;;  %s73_s28 = int_to_ptr.vmem [resolvable:$true] %s72_s28 }
   0x6   :  { %s1047_s29 = scalar_lea.vmem %s45_s26, 2048  ;;  %p1052_p1 = scmp.lt.s32.totalorder %s45_s26, %s45_s26 }
   0x7   :  { %p1048_p0 = scmp.ne.s32.totalorder %s45_s26, %s1047_s29  ;;  %p1053_p2 = scmp.lt.s32.totalorder %s1047_s29, %s1047_s29 }
   0x9   :  { %p1054_p3 = por %p1053_p2, %p1052_p1 }
   0xb   :  { %p1055_p4 = pnand %p1054_p3, %p1048_p0 }
   0xd   :  { %1058 = shalt.err (!%p1055_p4)
}
   0xe   :  { %s1191_s30 = smov 128   ;;  %s1192_s14 = smov 8  }
   0xf   :  { %50 = dma.hbm_to_vmem [thread:$0]  %s1441_s3, 2048, %s45_s26, [#allocation6], %s1191_s30, %s1191_s30, %s1192_s14  }
  0x10   :  { %s1067_s17 = scalar_lea.vmem %s73_s28, 2048  ;;  %p1072_p6 = scmp.lt.s32.totalorder %s73_s28, %s73_s28 }
  0x11   :  { %p1068_p5 = scmp.ne.s32.totalorder %s73_s28, %s1067_s17  ;;  %p1073_p7 = scmp.lt.s32.totalorder %s1067_s17, %s1067_s17 }
  0x13   :  { %p1074_p8 = por %p1073_p7, %p1072_p6 }
  0x15   :  { %p1075_p9 = pnand %p1074_p8, %p1068_p5 }
  0x17   :  { %1078 = shalt.err (!%p1075_p9)
}
  0x18   :  { %78 = dma.hbm_to_vmem [thread:$0]  %s1445_s7, 2048, %s73_s28, [#allocation9], %s1191_s30, %s1191_s30, %s1192_s14  }
  0x19   :  { %s1193_s20 = smov [#allocation2]   ;;  %s1194_s22 = smov [#allocation7]  }
  0x1a   :  { %s30_s21 = sshll.u32 %s1193_s20, 4  ;;  %s58_s23 = sshll.u32 %s1194_s22, 4  ;;  %s31_s21 = int_to_ptr.vmem [resolvable:$true] %s30_s21  ;;  %s59_s23 = int_to_ptr.vmem [resolvable:$true] %s58_s23 }
  0x1b   :  { %s1087_s3 = scalar_lea.vmem %s31_s21, 2048  ;;  %p1092_p11 = scmp.lt.s32.totalorder %s31_s21, %s31_s21 }
  0x1c   :  { %p1088_p10 = scmp.ne.s32.totalorder %s31_s21, %s1087_s3  ;;  %p1093_p12 = scmp.lt.s32.totalorder %s1087_s3, %s1087_s3 }
  0x1e   :  { %p1094_p13 = por %p1093_p12, %p1092_p11 }
  0x20   :  { %p1095_p0 = pnand %p1094_p13, %p1088_p10 }
  0x22   :  { %1098 = shalt.err (!%p1095_p0)
}
  0x23   :  { %36 = dma.hbm_to_vmem [thread:$0]  %s1439_s1, 2048, %s31_s21, [#allocation3], %s1191_s30, %s1191_s30, %s1192_s14  }
  0x24   :  { %s1107_s7 = scalar_lea.vmem %s59_s23, 2048  ;;  %p1112_p2 = scmp.lt.s32.totalorder %s59_s23, %s59_s23 }
  0x25   :  { %p1108_p1 = scmp.ne.s32.totalorder %s59_s23, %s1107_s7  ;;  %p1113_p3 = scmp.lt.s32.totalorder %s1107_s7, %s1107_s7 }
  0x27   :  { %p1114_p4 = por %p1113_p3, %p1112_p2 }
  0x29   :  { %p1115_p5 = pnand %p1114_p4, %p1108_p1 }
  0x2b   :  { %1118 = shalt.err (!%p1115_p5)
}
  0x2c   :  { %64 = dma.hbm_to_vmem [thread:$0]  %s1443_s5, 2048, %s59_s23, [#allocation6], %s1191_s30, %s1191_s30, %s1192_s14  }
  0x2d   :  { %s1195_s28 = smov [#allocation10]   ;;  %s1196_s15 = smov [#allocation11]  }
  0x2e   :  { %s86_s29 = sshll.u32 %s1195_s28, 4  ;;  %s100_s16 = sshll.u32 %s1196_s15, 4  ;;  %s87_s29 = int_to_ptr.vmem [resolvable:$true] %s86_s29  ;;  %s101_s16 = int_to_ptr.vmem [resolvable:$true] %s100_s16 }
  0x2f   :  { %s1127_s1 = scalar_lea.vmem %s87_s29, 2048  ;;  %p1132_p7 = scmp.lt.s32.totalorder %s87_s29, %s87_s29 }
  0x30   :  { %p1128_p6 = scmp.ne.s32.totalorder %s87_s29, %s1127_s1  ;;  %p1133_p8 = scmp.lt.s32.totalorder %s1127_s1, %s1127_s1 }
  0x32   :  { %p1134_p9 = por %p1133_p8, %p1132_p7 }
  0x34   :  { %p1135_p10 = pnand %p1134_p9, %p1128_p6 }
  0x36   :  { %1138 = shalt.err (!%p1135_p10)
}
  0x37   :  { %92 = dma.hbm_to_vmem [thread:$0]  %s1447_s9, 2048, %s87_s29, [#allocation9], %s1191_s30, %s1191_s30, %s1192_s14  }
  0x38   :  { %s1147_s5 = scalar_lea.vmem %s101_s16, 2048  ;;  %p1152_p12 = scmp.lt.s32.totalorder %s101_s16, %s101_s16 }
  0x39   :  { %p1148_p11 = scmp.ne.s32.totalorder %s101_s16, %s1147_s5  ;;  %p1153_p13 = scmp.lt.s32.totalorder %s1147_s5, %s1147_s5 }
  0x3b   :  { %p1154_p0 = por %p1153_p13, %p1152_p12 }
  0x3d   :  { %p1155_p1 = pnand %p1154_p0, %p1148_p11 }
  0x3f   :  { %1158 = shalt.err (!%p1155_p1)
}
  0x40   :  { %106 = dma.hbm_to_vmem [thread:$0]  %s1449_s11, 2048, %s101_s16, [#allocation12], %s1191_s30, %s1191_s30, %s1192_s14  }
  0x41   :  { %1179 = dma.done.wait [#allocation3], 2048  }
  0x42   :  { %1180 = vsyncadd [#allocation3], 4294965248 }
  0x43   :  { %1181 = dma.done.wait [#allocation6], 4096  }
  0x44   :  { %1182 = vsyncadd [#allocation6], 4294963200 }
  0x45   :  { %1183 = dma.done.wait [#allocation9], 4096  }
  0x46   :  { %1184 = vsyncadd [#allocation9], 4294963200 }
  0x47   :  { %1185 = dma.done.wait [#allocation12], 2048  }
  0x48   :  { %1186 = vsyncadd [#allocation12], 4294965248  ;;  %v1197_v0 = vmov 0.0   ;;  %vm1198_vm0 = vmmov 0   ;;  %v143_v1 = vld [vmem:[#allocation2 + $0x78] sm:$0xff]  ;;  %v142_v2 = vld [vmem:[#allocation2 + $0x70] sm:$0xff] }
  0x49   :  { %818 = vmatprep.subr.mxu0 %v1197_v0  ;;  %850 = vmatprep.mubr.msk.f32.mxu0 %vm1198_vm0, %v1197_v0  ;;  %v141_v3 = vld [vmem:[#allocation2 + $0x68] sm:$0xff]  ;;  %v140_v4 = vld [vmem:[#allocation2 + $0x60] sm:$0xff]  ;;  %v237_v5 = vld [vmem:[#allocation5 + $0x78] sm:$0xff]  ;;  %s1199_s25 = smov [#allocation13]  }
  0x4a   :  { %853 = vmatprep.subr.mxu1 %v1197_v0  ;;  %885 = vmatprep.mubr.msk.f32.mxu1 %vm1198_vm0, %v1197_v0  ;;  %v139_v6 = vld [vmem:[#allocation2 + $0x58] sm:$0xff]  ;;  %v236_v7 = vld [vmem:[#allocation5 + $0x70] sm:$0xff]  ;;  %v235_v8 = vld [vmem:[#allocation5 + $0x68] sm:$0xff]  ;;  %s698_s7 = sshll.u32 %s1199_s25, 4  ;;  %s699_s7 = int_to_ptr.vmem [resolvable:$true] %s698_s7 }
  0x4b   :  { %819 = vmatpush3.msra.mxu0 %v143_v1  ;;  %854 = vmatpush3.msra.mxu1 %v237_v5  ;;  %v138_v9 = vld [vmem:[#allocation2 + $0x50] sm:$0xff]  ;;  %v234_v10 = vld [vmem:[#allocation5 + $0x60] sm:$0xff]  ;;  %v137_v11 = vld [vmem:[#allocation2 + $0x48] sm:$0xff]  ;;  %s1159_s26 = scalar_lea.vmem %s699_s7, 128  ;;  %p1164_p3 = scmp.lt.s32.totalorder %s699_s7, %s699_s7 }
  0x4c   :  { %820 = vmatprep.subr.mxu0 %v1197_v0  ;;  %855 = vmatprep.subr.mxu1 %v1197_v0  ;;  %v233_v12 = vld [vmem:[#allocation5 + $0x58] sm:$0xff]  ;;  %v136_v13 = vld [vmem:[#allocation2 + $0x40] sm:$0xff]  ;;  %v232_v14 = vld [vmem:[#allocation5 + $0x50] sm:$0xff]  ;;  %p1160_p2 = scmp.ne.s32.totalorder %s699_s7, %s1159_s26  ;;  %p1165_p4 = scmp.lt.s32.totalorder %s1159_s26, %s1159_s26 }
  0x4d   :  { %821 = vmatpush3.msra.mxu0 %v142_v2  ;;  %856 = vmatpush3.msra.mxu1 %v236_v7  ;;  %v135_v15 = vld [vmem:[#allocation2 + $0x38] sm:$0xff]  ;;  %v231_v16 = vld [vmem:[#allocation5 + $0x48] sm:$0xff]  ;;  %v134_v17 = vld [vmem:[#allocation2 + $0x30] sm:$0xff] }
  0x4e   :  { %822 = vmatprep.subr.mxu0 %v1197_v0  ;;  %857 = vmatprep.subr.mxu1 %v1197_v0  ;;  %v230_v18 = vld [vmem:[#allocation5 + $0x40] sm:$0xff]  ;;  %v133_v19 = vld [vmem:[#allocation2 + $0x28] sm:$0xff]  ;;  %v229_v20 = vld [vmem:[#allocation5 + $0x38] sm:$0xff]  ;;  %p1166_p5 = por %p1165_p4, %p1164_p3 }
  0x4f   :  { %823 = vmatpush3.msra.mxu0 %v141_v3  ;;  %858 = vmatpush3.msra.mxu1 %v235_v8  ;;  %v132_v21 = vld [vmem:[#allocation2 + $0x20] sm:$0xff]  ;;  %v228_v22 = vld [vmem:[#allocation5 + $0x30] sm:$0xff]  ;;  %v131_v23 = vld [vmem:[#allocation2 + $0x18] sm:$0xff] }
  0x50   :  { %824 = vmatprep.subr.mxu0 %v1197_v0  ;;  %859 = vmatprep.subr.mxu1 %v1197_v0  ;;  %v227_v24 = vld [vmem:[#allocation5 + $0x28] sm:$0xff]  ;;  %v130_v25 = vld [vmem:[#allocation2 + $0x10] sm:$0xff]  ;;  %v226_v26 = vld [vmem:[#allocation5 + $0x20] sm:$0xff]  ;;  %p1167_p6 = pnand %p1166_p5, %p1160_p2 }
  0x51   :  { %825 = vmatpush3.msra.mxu0 %v140_v4  ;;  %860 = vmatpush3.msra.mxu1 %v234_v10  ;;  %v129_v27 = vld [vmem:[#allocation2 + $0x8] sm:$0xff]  ;;  %v225_v28 = vld [vmem:[#allocation5 + $0x18] sm:$0xff]  ;;  %v128_v29 = vld [vmem:[#allocation2] sm:$0xff] }
  0x52   :  { %826 = vmatprep.subr.mxu0 %v1197_v0  ;;  %861 = vmatprep.subr.mxu1 %v1197_v0  ;;  %v127_v30 = vld [vmem:[%s1438_s0] sm:$0xff]  ;;  %v224_v31 = vld [vmem:[#allocation5 + $0x10] sm:$0xff]  ;;  %v223_v32 = vld [vmem:[#allocation5 + $0x8] sm:$0xff] }
  0x53   :  { %827 = vmatpush3.msra.mxu0 %v139_v6  ;;  %862 = vmatpush3.msra.mxu1 %v233_v12  ;;  %v222_v33 = vld [vmem:[#allocation5] sm:$0xff]  ;;  %v331_v34 = vld [vmem:[#allocation7 + $0x78] sm:$0xff]  ;;  %v330_v35 = vld [vmem:[#allocation7 + $0x70] sm:$0xff] }
  0x54   :  { %828 = vmatprep.subr.mxu0 %v1197_v0  ;;  %863 = vmatprep.subr.mxu1 %v1197_v0  ;;  %v329_v36 = vld [vmem:[#allocation7 + $0x68] sm:$0xff]  ;;  %v328_v37 = vld [vmem:[#allocation7 + $0x60] sm:$0xff]  ;;  %v327_v38 = vld [vmem:[#allocation7 + $0x58] sm:$0xff] }
  0x55   :  { %829 = vmatpush3.msra.mxu0 %v138_v9  ;;  %864 = vmatpush3.msra.mxu1 %v232_v14  ;;  %v326_v39 = vld [vmem:[#allocation7 + $0x50] sm:$0xff]  ;;  %v325_v40 = vld [vmem:[#allocation7 + $0x48] sm:$0xff]  ;;  %v324_v41 = vld [vmem:[#allocation7 + $0x40] sm:$0xff] }
  0x56   :  { %830 = vmatprep.subr.mxu0 %v1197_v0  ;;  %865 = vmatprep.subr.mxu1 %v1197_v0  ;;  %v323_v42 = vld [vmem:[#allocation7 + $0x38] sm:$0xff]  ;;  %v322_v43 = vld [vmem:[#allocation7 + $0x30] sm:$0xff]  ;;  %v321_v44 = vld [vmem:[#allocation7 + $0x28] sm:$0xff] }
  0x57   :  { %831 = vmatpush3.msra.mxu0 %v137_v11  ;;  %866 = vmatpush3.msra.mxu1 %v231_v16  ;;  %v320_v45 = vld [vmem:[#allocation7 + $0x20] sm:$0xff]  ;;  %v319_v46 = vld [vmem:[#allocation7 + $0x18] sm:$0xff]  ;;  %v318_v52 = vld [vmem:[#allocation7 + $0x10] sm:$0xff] }
  0x58   :  { %832 = vmatprep.subr.mxu0 %v1197_v0  ;;  %867 = vmatprep.subr.mxu1 %v1197_v0  ;;  %v710_v47 = vld [vmem:[%s1440_s2] ss:$0 sm:$0xff]  ;;  %v317_v53 = vld [vmem:[#allocation7 + $0x8] sm:$0xff]  ;;  %v425_v55 = vld [vmem:[#allocation8 + $0x78] sm:$0xff] }
  0x59   :  { %833 = vmatpush3.msra.mxu0 %v136_v13  ;;  %868 = vmatpush3.msra.mxu1 %v230_v18  ;;  %v316_v54 = vld [vmem:[#allocation7] sm:$0xff]  ;;  %v424_v56 = vld [vmem:[#allocation8 + $0x70] sm:$0xff]  ;;  %v423_v57 = vld [vmem:[#allocation8 + $0x68] sm:$0xff] }
  0x5a   :  { %834 = vmatprep.subr.mxu0 %v1197_v0  ;;  %869 = vmatprep.subr.mxu1 %v1197_v0  ;;  %v422_v58 = vld [vmem:[#allocation8 + $0x60] sm:$0xff]  ;;  %v421_v59 = vld [vmem:[#allocation8 + $0x58] sm:$0xff]  ;;  %v420_v60 = vld [vmem:[#allocation8 + $0x50] sm:$0xff] }
  0x5b   :  { %835 = vmatpush3.msra.mxu0 %v135_v15  ;;  %870 = vmatpush3.msra.mxu1 %v229_v20  ;;  %v419_v61 = vld [vmem:[#allocation8 + $0x48] sm:$0xff]  ;;  %v418_v62 = vld [vmem:[#allocation8 + $0x40] sm:$0xff]  ;;  %v417_v63 = vld [vmem:[#allocation8 + $0x38] sm:$0xff] }
  0x5c   :  { %836 = vmatprep.subr.mxu0 %v1197_v0  ;;  %871 = vmatprep.subr.mxu1 %v1197_v0  ;;  %v416_v1 = vld [vmem:[#allocation8 + $0x30] sm:$0xff]  ;;  %v415_v2 = vld [vmem:[#allocation8 + $0x28] sm:$0xff]  ;;  %v414_v3 = vld [vmem:[#allocation8 + $0x20] sm:$0xff] }
  0x5d   :  { %837 = vmatpush3.msra.mxu0 %v134_v17  ;;  %872 = vmatpush3.msra.mxu1 %v228_v22  ;;  %v413_v4 = vld [vmem:[#allocation8 + $0x18] sm:$0xff]  ;;  %v711_v5 = vld [vmem:[%s1442_s4] ss:$0 sm:$0xff]  ;;  %v412_v10 = vld [vmem:[#allocation8 + $0x10] sm:$0xff] }
  0x5e   :  { %838 = vmatprep.subr.mxu0 %v1197_v0  ;;  %873 = vmatprep.subr.mxu1 %v1197_v0  ;;  %v411_v11 = vld [vmem:[#allocation8 + $0x8] sm:$0xff]  ;;  %v410_v12 = vld [vmem:[#allocation8] sm:$0xff]  ;;  %v519_v13 = vld [vmem:[#allocation10 + $0x78] sm:$0xff] }
  0x5f   :  { %839 = vmatpush3.msra.mxu0 %v133_v19  ;;  %874 = vmatpush3.msra.mxu1 %v227_v24  ;;  %v518_v14 = vld [vmem:[#allocation10 + $0x70] sm:$0xff]  ;;  %v517_v15 = vld [vmem:[#allocation10 + $0x68] sm:$0xff]  ;;  %v516_v16 = vld [vmem:[#allocation10 + $0x60] sm:$0xff] }
  0x60   :  { %840 = vmatprep.subr.mxu0 %v1197_v0  ;;  %875 = vmatprep.subr.mxu1 %v1197_v0  ;;  %v515_v17 = vld [vmem:[#allocation10 + $0x58] sm:$0xff]  ;;  %v514_v18 = vld [vmem:[#allocation10 + $0x50] sm:$0xff]  ;;  %v513_v19 = vld [vmem:[#allocation10 + $0x48] sm:$0xff] }
  0x61   :  { %841 = vmatpush3.msra.mxu0 %v132_v21  ;;  %876 = vmatpush3.msra.mxu1 %v226_v26  ;;  %v512_v20 = vld [vmem:[#allocation10 + $0x40] sm:$0xff]  ;;  %v511_v21 = vld [vmem:[#allocation10 + $0x38] sm:$0xff]  ;;  %v510_v22 = vld [vmem:[#allocation10 + $0x30] sm:$0xff] }
  0x62   :  { %842 = vmatprep.subr.mxu0 %v1197_v0  ;;  %877 = vmatprep.subr.mxu1 %v1197_v0  ;;  %v508_v24 = vld [vmem:[#allocation10 + $0x20] sm:$0xff] }
  0x63   :  { %843 = vmatpush3.msra.mxu0 %v131_v23  ;;  %878 = vmatpush3.msra.mxu1 %v225_v28  ;;  %v509_v23 = vld [vmem:[#allocation10 + $0x28] sm:$0xff]  ;;  %v712_v26 = vld [vmem:[%s1444_s6] ss:$0 sm:$0xff] }
  0x64   :  { %844 = vmatprep.subr.mxu0 %v1197_v0  ;;  %879 = vmatprep.subr.mxu1 %v1197_v0 }
  0x65   :  { %845 = vmatpush3.msra.mxu0 %v130_v25  ;;  %880 = vmatpush3.msra.mxu1 %v224_v31  ;;  %v507_v25 = vld [vmem:[#allocation10 + $0x18] sm:$0xff]  ;;  %v506_v31 = vld [vmem:[#allocation10 + $0x10] sm:$0xff] }
  0x66   :  { %846 = vmatprep.subr.mxu0 %v1197_v0  ;;  %881 = vmatprep.subr.mxu1 %v1197_v0 }
  0x67   :  { %847 = vmatpush3.msra.mxu0 %v129_v27  ;;  %882 = vmatpush3.msra.mxu1 %v223_v32  ;;  %v505_v32 = vld [vmem:[#allocation10 + $0x8] sm:$0xff] }
  0x68   :  { %848 = vmatprep.subr.mxu0 %v1197_v0  ;;  %883 = vmatprep.subr.mxu1 %v1197_v0 }
  0x69   :  { %849 = vmatpush3.msra.mxu0 %v128_v29  ;;  %884 = vmatpush3.msra.mxu1 %v222_v33  ;;  %v504_v33 = vld [vmem:[#allocation10] sm:$0xff] }
  0x6a   :  { %851 = vmatmul.mubr.f32.vlgmr.msra.gmra.mxu0 %v127_v30  ;;  %888 = vmatprep.subr.mxu0 %v1197_v0 }
  0x6b   :  { %920 = vmatprep.mubr.msk.f32.mxu0 %vm1198_vm0, %v1197_v0  ;;  %923 = vmatprep.subr.mxu1 %v1197_v0 }
  0x6c   :  { %889 = vmatpush3.msra.mxu0 %v331_v34  ;;  %v613_v34 = vld [vmem:[#allocation11 + $0x78] sm:$0xff] }
  0x6d   :  { %890 = vmatprep.subr.mxu0 %v1197_v0 }
  0x6e   :  { %891 = vmatpush3.msra.mxu0 %v330_v35  ;;  %v612_v35 = vld [vmem:[#allocation11 + $0x70] sm:$0xff] }
  0x6f   :  { %892 = vmatprep.subr.mxu0 %v1197_v0 }
  0x70   :  { %893 = vmatpush3.msra.mxu0 %v329_v36  ;;  %v611_v36 = vld [vmem:[#allocation11 + $0x68] sm:$0xff] }
  0x71   :  { %894 = vmatprep.subr.mxu0 %v1197_v0 }
  0x72   :  { %895 = vmatpush3.msra.mxu0 %v328_v37  ;;  %v610_v37 = vld [vmem:[#allocation11 + $0x60] sm:$0xff] }
  0x73   :  { %896 = vmatprep.subr.mxu0 %v1197_v0 }
  0x74   :  { %897 = vmatpush3.msra.mxu0 %v327_v38  ;;  %v609_v38 = vld [vmem:[#allocation11 + $0x58] sm:$0xff] }
  0x75   :  { %898 = vmatprep.subr.mxu0 %v1197_v0 }
  0x76   :  { %899 = vmatpush3.msra.mxu0 %v326_v39  ;;  %v608_v39 = vld [vmem:[#allocation11 + $0x50] sm:$0xff] }
  0x77   :  { %900 = vmatprep.subr.mxu0 %v1197_v0 }
  0x78   :  { %901 = vmatpush3.msra.mxu0 %v325_v40  ;;  %v607_v40 = vld [vmem:[#allocation11 + $0x48] sm:$0xff] }
  0x79   :  { %902 = vmatprep.subr.mxu0 %v1197_v0 }
  0x7a   :  { %903 = vmatpush3.msra.mxu0 %v324_v41  ;;  %v606_v41 = vld [vmem:[#allocation11 + $0x40] sm:$0xff] }
  0x7b   :  { %904 = vmatprep.subr.mxu0 %v1197_v0 }
  0x7c   :  { %905 = vmatpush3.msra.mxu0 %v323_v42  ;;  %v605_v42 = vld [vmem:[#allocation11 + $0x38] sm:$0xff] }
  0x7d   :  { %906 = vmatprep.subr.mxu0 %v1197_v0 }
  0x7e   :  { %907 = vmatpush3.msra.mxu0 %v322_v43  ;;  %v604_v43 = vld [vmem:[#allocation11 + $0x30] sm:$0xff] }
  0x7f   :  { %908 = vmatprep.subr.mxu0 %v1197_v0 }
  0x80   :  { %909 = vmatpush3.msra.mxu0 %v321_v44  ;;  %v603_v44 = vld [vmem:[#allocation11 + $0x28] sm:$0xff] }
  0x81   :  { %910 = vmatprep.subr.mxu0 %v1197_v0 }
  0x82   :  { %911 = vmatpush3.msra.mxu0 %v320_v45  ;;  %v602_v45 = vld [vmem:[#allocation11 + $0x20] sm:$0xff] }
  0x83   :  { %912 = vmatprep.subr.mxu0 %v1197_v0 }
  0x84   :  { %913 = vmatpush3.msra.mxu0 %v319_v46  ;;  %v601_v46 = vld [vmem:[#allocation11 + $0x18] sm:$0xff] }
  0x85   :  { %914 = vmatprep.subr.mxu0 %v1197_v0 }
  0x86   :  { %915 = vmatpush3.msra.mxu0 %v318_v52  ;;  %v600_v52 = vld [vmem:[#allocation11 + $0x10] sm:$0xff] }
  0x87   :  { %916 = vmatprep.subr.mxu0 %v1197_v0 }
  0x88   :  { %917 = vmatpush3.msra.mxu0 %v317_v53  ;;  %v599_v53 = vld [vmem:[#allocation11 + $0x8] sm:$0xff] }
  0x89   :  { %918 = vmatprep.subr.mxu0 %v1197_v0 }
  0x8a   :  { %919 = vmatpush3.msra.mxu0 %v316_v54  ;;  %v598_v54 = vld [vmem:[#allocation11] sm:$0xff] }
  0x8b   :  { %958 = vmatprep.subr.mxu0 %v1197_v0 }
 0x12a   :  { %v217_v48 = vpop.f32.mrf.mxu0 }
 0x12b   :  { %v218_v49 = vadd.f32 %v710_v47, %v217_v48  ;;  %v713_v47 = vld [vmem:[%s1446_s8] ss:$0 sm:$0xff] }
 0x12c   :  { %v852_v50 = vpop.f32.mrf.mxu0 }
 0x12d   :  { %v221_v51 = vmax.f32 %v218_v49, 0.0 }
 0x12f   :  { %886 = vmatmul.mubr.f32.vlgmr.msra.gmra.mxu1 %v221_v51 }
 0x130   :  { %955 = vmatprep.mubr.msk.f32.mxu1 %vm1198_vm0, %v1197_v0  ;;  %924 = vmatpush3.msra.mxu1 %v425_v55  ;;  %v714_v55 = vld [vmem:[%s1448_s10] ss:$0 sm:$0xff] }
 0x131   :  { %925 = vmatprep.subr.mxu1 %v1197_v0 }
 0x132   :  { %926 = vmatpush3.msra.mxu1 %v424_v56 }
 0x133   :  { %927 = vmatprep.subr.mxu1 %v1197_v0 }
 0x134   :  { %928 = vmatpush3.msra.mxu1 %v423_v57 }
 0x135   :  { %929 = vmatprep.subr.mxu1 %v1197_v0 }
 0x136   :  { %930 = vmatpush3.msra.mxu1 %v422_v58 }
 0x137   :  { %931 = vmatprep.subr.mxu1 %v1197_v0 }
 0x138   :  { %932 = vmatpush3.msra.mxu1 %v421_v59 }
 0x139   :  { %933 = vmatprep.subr.mxu1 %v1197_v0 }
 0x13a   :  { %934 = vmatpush3.msra.mxu1 %v420_v60  ;;  %v715_v60 = vld [vmem:[%s1450_s12] ss:$0 sm:$0xff] }
 0x13b   :  { %935 = vmatprep.subr.mxu1 %v1197_v0 }
 0x13c   :  { %936 = vmatpush3.msra.mxu1 %v419_v61 }
 0x13d   :  { %937 = vmatprep.subr.mxu1 %v1197_v0 }
 0x13e   :  { %938 = vmatpush3.msra.mxu1 %v418_v62 }
 0x13f   :  { %939 = vmatprep.subr.mxu1 %v1197_v0 }
 0x140   :  { %940 = vmatpush3.msra.mxu1 %v417_v63 }
 0x141   :  { %941 = vmatprep.subr.mxu1 %v1197_v0 }
 0x142   :  { %942 = vmatpush3.msra.mxu1 %v416_v1 }
 0x143   :  { %943 = vmatprep.subr.mxu1 %v1197_v0 }
 0x144   :  { %944 = vmatpush3.msra.mxu1 %v415_v2 }
 0x145   :  { %945 = vmatprep.subr.mxu1 %v1197_v0 }
 0x146   :  { %946 = vmatpush3.msra.mxu1 %v414_v3 }
 0x147   :  { %947 = vmatprep.subr.mxu1 %v1197_v0 }
 0x148   :  { %948 = vmatpush3.msra.mxu1 %v413_v4 }
 0x149   :  { %949 = vmatprep.subr.mxu1 %v1197_v0 }
 0x14a   :  { %950 = vmatpush3.msra.mxu1 %v412_v10 }
 0x14b   :  { %951 = vmatprep.subr.mxu1 %v1197_v0 }
 0x14c   :  { %952 = vmatpush3.msra.mxu1 %v411_v11 }
 0x14d   :  { %953 = vmatprep.subr.mxu1 %v1197_v0 }
 0x14e   :  { %954 = vmatpush3.msra.mxu1 %v410_v12 }
 0x14f   :  { %993 = vmatprep.subr.mxu1 %v1197_v0 }
 0x1ef   :  { %v311_v6 = vpop.f32.mrf.mxu1 }
 0x1f0   :  { %v312_v7 = vadd.f32 %v711_v5, %v311_v6 }
 0x1f1   :  { %v887_v8 = vpop.f32.mrf.mxu1 }
 0x1f2   :  { %v315_v9 = vmax.f32 %v312_v7, 0.0 }
 0x1f4   :  { %921 = vmatmul.mubr.f32.vlgmr.msra.gmra.mxu0 %v315_v9 }
 0x1f5   :  { %990 = vmatprep.mubr.msk.f32.mxu0 %vm1198_vm0, %v1197_v0  ;;  %959 = vmatpush3.msra.mxu0 %v519_v13 }
 0x1f6   :  { %960 = vmatprep.subr.mxu0 %v1197_v0 }
 0x1f7   :  { %961 = vmatpush3.msra.mxu0 %v518_v14 }
 0x1f8   :  { %962 = vmatprep.subr.mxu0 %v1197_v0 }
 0x1f9   :  { %963 = vmatpush3.msra.mxu0 %v517_v15 }
 0x1fa   :  { %964 = vmatprep.subr.mxu0 %v1197_v0 }
 0x1fb   :  { %965 = vmatpush3.msra.mxu0 %v516_v16 }
 0x1fc   :  { %966 = vmatprep.subr.mxu0 %v1197_v0 }
 0x1fd   :  { %967 = vmatpush3.msra.mxu0 %v515_v17 }
 0x1fe   :  { %968 = vmatprep.subr.mxu0 %v1197_v0 }
 0x1ff   :  { %969 = vmatpush3.msra.mxu0 %v514_v18 }
 0x200   :  { %970 = vmatprep.subr.mxu0 %v1197_v0 }
 0x201   :  { %971 = vmatpush3.msra.mxu0 %v513_v19 }
 0x202   :  { %972 = vmatprep.subr.mxu0 %v1197_v0 }
 0x203   :  { %973 = vmatpush3.msra.mxu0 %v512_v20 }
 0x204   :  { %974 = vmatprep.subr.mxu0 %v1197_v0 }
 0x205   :  { %975 = vmatpush3.msra.mxu0 %v511_v21 }
 0x206   :  { %976 = vmatprep.subr.mxu0 %v1197_v0 }
 0x207   :  { %977 = vmatpush3.msra.mxu0 %v510_v22 }
 0x208   :  { %978 = vmatprep.subr.mxu0 %v1197_v0 }
 0x209   :  { %979 = vmatpush3.msra.mxu0 %v509_v23 }
 0x20a   :  { %980 = vmatprep.subr.mxu0 %v1197_v0 }
 0x20b   :  { %981 = vmatpush3.msra.mxu0 %v508_v24 }
 0x20c   :  { %982 = vmatprep.subr.mxu0 %v1197_v0 }
 0x20d   :  { %983 = vmatpush3.msra.mxu0 %v507_v25 }
 0x20e   :  { %984 = vmatprep.subr.mxu0 %v1197_v0 }
 0x20f   :  { %985 = vmatpush3.msra.mxu0 %v506_v31 }
 0x210   :  { %986 = vmatprep.subr.mxu0 %v1197_v0 }
 0x211   :  { %987 = vmatpush3.msra.mxu0 %v505_v32 }
 0x212   :  { %988 = vmatprep.subr.mxu0 %v1197_v0 }
 0x213   :  { %989 = vmatpush3.msra.mxu0 %v504_v33 }
 0x2b4   :  { %v405_v27 = vpop.f32.mrf.mxu0 }
 0x2b5   :  { %v406_v28 = vadd.f32 %v712_v26, %v405_v27 }
 0x2b6   :  { %v922_v29 = vpop.f32.mrf.mxu0 }
 0x2b7   :  { %v409_v30 = vmax.f32 %v406_v28, 0.0 }
 0x2b9   :  { %956 = vmatmul.mubr.f32.vlgmr.msra.gmra.mxu1 %v409_v30 }
 0x2ba   :  { %1025 = vmatprep.mubr.msk.f32.mxu1 %vm1198_vm0, %v1197_v0  ;;  %994 = vmatpush3.msra.mxu1 %v613_v34 }
 0x2bb   :  { %995 = vmatprep.subr.mxu1 %v1197_v0 }
 0x2bc   :  { %996 = vmatpush3.msra.mxu1 %v612_v35 }
 0x2bd   :  { %997 = vmatprep.subr.mxu1 %v1197_v0 }
 0x2be   :  { %998 = vmatpush3.msra.mxu1 %v611_v36 }
 0x2bf   :  { %999 = vmatprep.subr.mxu1 %v1197_v0 }
 0x2c0   :  { %1000 = vmatpush3.msra.mxu1 %v610_v37 }
 0x2c1   :  { %1001 = vmatprep.subr.mxu1 %v1197_v0 }
 0x2c2   :  { %1002 = vmatpush3.msra.mxu1 %v609_v38 }
 0x2c3   :  { %1003 = vmatprep.subr.mxu1 %v1197_v0 }
 0x2c4   :  { %1004 = vmatpush3.msra.mxu1 %v608_v39 }
 0x2c5   :  { %1005 = vmatprep.subr.mxu1 %v1197_v0 }
 0x2c6   :  { %1006 = vmatpush3.msra.mxu1 %v607_v40 }
 0x2c7   :  { %1007 = vmatprep.subr.mxu1 %v1197_v0 }
 0x2c8   :  { %1008 = vmatpush3.msra.mxu1 %v606_v41 }
 0x2c9   :  { %1009 = vmatprep.subr.mxu1 %v1197_v0 }
 0x2ca   :  { %1010 = vmatpush3.msra.mxu1 %v605_v42 }
 0x2cb   :  { %1011 = vmatprep.subr.mxu1 %v1197_v0 }
 0x2cc   :  { %1012 = vmatpush3.msra.mxu1 %v604_v43 }
 0x2cd   :  { %1013 = vmatprep.subr.mxu1 %v1197_v0 }
 0x2ce   :  { %1014 = vmatpush3.msra.mxu1 %v603_v44 }
 0x2cf   :  { %1015 = vmatprep.subr.mxu1 %v1197_v0 }
 0x2d0   :  { %1016 = vmatpush3.msra.mxu1 %v602_v45 }
 0x2d1   :  { %1017 = vmatprep.subr.mxu1 %v1197_v0 }
 0x2d2   :  { %1018 = vmatpush3.msra.mxu1 %v601_v46 }
 0x2d3   :  { %1019 = vmatprep.subr.mxu1 %v1197_v0 }
 0x2d4   :  { %1020 = vmatpush3.msra.mxu1 %v600_v52 }
 0x2d5   :  { %1021 = vmatprep.subr.mxu1 %v1197_v0 }
 0x2d6   :  { %1022 = vmatpush3.msra.mxu1 %v599_v53 }
 0x2d7   :  { %1023 = vmatprep.subr.mxu1 %v1197_v0 }
 0x2d8   :  { %1024 = vmatpush3.msra.mxu1 %v598_v54 }
 0x379   :  { %v499_v48 = vpop.f32.mrf.mxu1 }
 0x37a   :  { %v500_v49 = vadd.f32 %v713_v47, %v499_v48 }
 0x37b   :  { %v957_v50 = vpop.f32.mrf.mxu1 }
 0x37c   :  { %v503_v51 = vmax.f32 %v500_v49, 0.0 }
 0x37e   :  { %991 = vmatmul.mubr.f32.vlgmr.msra.gmra.mxu0 %v503_v51 }
 0x43e   :  { %v593_v56 = vpop.f32.mrf.mxu0 }
 0x43f   :  { %v594_v57 = vadd.f32 %v714_v55, %v593_v56 }
 0x440   :  { %v992_v58 = vpop.f32.mrf.mxu0 }
 0x441   :  { %v597_v59 = vmax.f32 %v594_v57, 0.0 }
 0x443   :  { %1026 = vmatmul.mubr.f32.vlgmr.msra.gmra.mxu1 %v597_v59 }
 0x503   :  { %v687_v61 = vpop.f32.mrf.mxu1 }
 0x504   :  { %v688_v62 = vadd.f32 %v715_v60, %v687_v61 }
 0x505   :  { %v1027_v0 = vpop.f32.mrf.mxu1 }
 0x506   :  { %691 = vst [vmem:[#allocation13] sm:$0xff] %v688_v62 }
 0x507   :  { %1170 = shalt.err (!%p1167_p6)
}
 0x508   :  { %701 = dma.vmem_to_hbm [thread:$0]  %s699_s7, 128, %s1451_s13, [#allocation4]  }
 0x509   :  { %1187 = dma.done.wait [#allocation4], 128  }
 0x50a   :  { %1188 = vsyncadd [#allocation4], 4294967168 }
 0x50b   :  { %705 = vsyncpa [#allocation3], 1 }
 0x50c   :  { %706 = vsyncpa [#allocation6], 1 }
 0x50d   :  { %707 = vsyncpa [#allocation9], 1 }
 0x50e   :  { %708 = vsyncpa [#allocation12], 1 }
 0x50f   :  { %709 = vsyncpa [#allocation4], 1 }

</bundles_post_ra>
